<compile_context>
chip_gen: v5e
topology: v5e:2x2
jax: 0.10.0
libtpu: 0.0.40
codegen_flags: <defaults>
</compile_context>

<pallas_src>
import functools

import jax
import jax.numpy as jnp
from jax.experimental import pallas as pl
from jax.experimental.pallas import tpu as pltpu

_LANE = 128


# ----------------------------------------------------------------------------
# Chip / tiling helpers
# ----------------------------------------------------------------------------
def _round_up(x, m):
    return ((x + m - 1) // m) * m


@functools.lru_cache(maxsize=None)
def _vmem_limit_bytes():
    """Scoped-VMEM limit derived from the chip (v5e/v6e: 128 MiB, v7x: 64 MiB)."""
    try:
        cap = int(pltpu.get_tpu_info().vmem_capacity_bytes)
        if cap > 0:
            return (cap * 3) // 4
    except Exception:
        pass
    return 64 * 1024 * 1024  # conservative fallback, safe on every generation


def _aligned_tile_candidates(dim):
    """Descending legal lane-dim tiles: 128-multiples dividing dim, else the full dim."""
    if dim % _LANE == 0:
        return [t for t in range(dim, 0, -_LANE) if dim % t == 0]
    return [dim]


def _choose_tiles(n, kdim, h, sx, sw, sy, budget):
    """Pick (tn, tk) so the double-buffered working set fits `budget` bytes.

    Prefers tk == kdim (single-K pass): no f32 accumulator scratch and the x block
    index is grid-invariant, so x is DMA'd from HBM exactly once per call instead
    of once per output-feature tile.  The feature axis keeps >= 2 blocks when it
    can (megacore sharding on 2-TensorCore chips; negligible cost elsewhere).
    """
    tn_cands = _aligned_tile_candidates(h)
    if h % (2 * _LANE) == 0:
        tn_cands = [t for t in tn_cands if t <= h // 2] or tn_cands
    tk_cands = _aligned_tile_candidates(kdim)

    def usage(tn, tk, nk):
        u = 2 * n * tk * sx + 2 * tk * tn * sw + 2 * n * tn * sy
        u += 16 * tn * 4                      # small (1, tn) param / stat blocks
        if nk > 1:
            u += n * tn * 4                   # f32 accumulator scratch
        return u

    for tn in tn_cands:                       # Path A: single K pass
        if usage(tn, kdim, 1) <= budget:
            return tn, kdim
    for tn in tn_cands:                       # Path B: tiled K with accumulator
        for tk in tk_cands:
            if tk == kdim:
                continue
            if usage(tn, tk, kdim // tk) <= budget:
                return tn, tk
    return tn_cands[-1], tk_cands[-1]         # nothing fits: smallest legal tiles


def _pad_last(a, to, value=0.0):
    pad = to - a.shape[-1]
    if pad <= 0:
        return a
    return jnp.pad(a, [(0, 0)] * (a.ndim - 1) + [(0, pad)], constant_values=value)


# ----------------------------------------------------------------------------
# Kernels
# ----------------------------------------------------------------------------
def _bn_relu_epilogue(acc, b, g, beta, rm, rv, y_ref, nrm_ref, nrv_ref,
                      n_batch, eps, momentum, unbiased):
    """BatchNorm1d(training) + ReLU on an f32 (N, tn) tile resident in VMEM.

    The linear bias cancels in (z - mean), so it is only added to the running-mean
    update.  mean/var come from one pass over the tile (sum, sum-of-squares).
    """
    inv_n = 1.0 / float(n_batch)
    s1 = jnp.sum(acc, axis=0, keepdims=True)            # (1, tn)
    s2 = jnp.sum(acc * acc, axis=0, keepdims=True)       # (1, tn)
    mean = s1 * inv_n
    var = jnp.maximum(s2 * inv_n - mean * mean, 0.0)     # biased batch variance
    inv_std = jax.lax.rsqrt(var + eps)                   # EUP, off the VPU path
    scale = g * inv_std
    y = (acc - mean) * scale + beta
    y_ref[...] = jnp.maximum(y, 0.0).astype(y_ref.dtype)
    # Running stats: biased mean (bias folded back in), unbiased variance.
    nrm_ref[...] = (1.0 - momentum) * rm + momentum * (mean + b)
    nrv_ref[...] = (1.0 - momentum) * rv + momentum * (var * unbiased)


def _make_fused_kernel_single_k(n_batch, eps, momentum):
    # TODO(synk): PyTorch raises for N==1 in training mode; here it degenerates to factor 1.
    unbiased = float(n_batch) / float(max(n_batch - 1, 1))

    def kernel(x_ref, w_ref, b_ref, g_ref, beta_ref, rm_ref, rv_ref,
               y_ref, nrm_ref, nrv_ref):
        acc = jnp.dot(x_ref[...], w_ref[...], preferred_element_type=jnp.float32)
        _bn_relu_epilogue(acc, b_ref[...], g_ref[...], beta_ref[...],
                          rm_ref[...], rv_ref[...], y_ref, nrm_ref, nrv_ref,
                          n_batch, eps, momentum, unbiased)

    return kernel


def _make_fused_kernel_tiled_k(n_batch, eps, momentum):
    unbiased = float(n_batch) / float(max(n_batch - 1, 1))

    def kernel(x_ref, w_ref, b_ref, g_ref, beta_ref, rm_ref, rv_ref,
               y_ref, nrm_ref, nrv_ref, acc_ref):
        k = pl.program_id(1)

        @pl.when(k == 0)
        def _():
            acc_ref[...] = jnp.zeros_like(acc_ref)

        acc_ref[...] += jnp.dot(x_ref[...], w_ref[...],
                                preferred_element_type=jnp.float32)

        @pl.when(k == pl.num_programs(1) - 1)
        def _():
            _bn_relu_epilogue(acc_ref[...], b_ref[...], g_ref[...], beta_ref[...],
                              rm_ref[...], rv_ref[...], y_ref, nrm_ref, nrv_ref,
                              n_batch, eps, momentum, unbiased)

    return kernel


def _linear_kernel_single_k(x_ref, w_ref, b_ref, y_ref):
    y_ref[...] = (jnp.dot(x_ref[...], w_ref[...],
                          preferred_element_type=jnp.float32)
                  + b_ref[...]).astype(y_ref.dtype)


def _linear_kernel_tiled_k(x_ref, w_ref, b_ref, y_ref, acc_ref):
    k = pl.program_id(1)

    @pl.when(k == 0)
    def _():
        acc_ref[...] = jnp.zeros_like(acc_ref)

    acc_ref[...] += jnp.dot(x_ref[...], w_ref[...],
                            preferred_element_type=jnp.float32)

    @pl.when(k == pl.num_programs(1) - 1)
    def _():
        y_ref[...] = (acc_ref[...] + b_ref[...]).astype(y_ref.dtype)


# ----------------------------------------------------------------------------
# Wrappers
# ----------------------------------------------------------------------------
def fused_linear_bn_relu(x, w, b, gamma, beta, running_mean, running_var,
                         *, eps=1e-5, momentum=0.1, matmul_dtype=None):
    """Fused Linear(K->H) + BatchNorm1d(H) (training mode) + ReLU.

    x: (N, K), w: (K, H), b/gamma/beta/running_*: (H,)
    Returns (y (N, H), new_running_mean (H,), new_running_var (H,)).
    """
    n, kdim = x.shape
    kdim_w, h = w.shape
    assert kdim == kdim_w
    out_dtype = x.dtype
    if matmul_dtype is not None:                 # bf16-native MXU path; acc stays f32
        x = x.astype(matmul_dtype)
        w = w.astype(matmul_dtype)

    hp = _round_up(h, _LANE)                     # lane-dense output stores
    wp = _pad_last(w, hp)
    b2 = _pad_last(b.reshape(1, h).astype(jnp.float32), hp)
    g2 = _pad_last(gamma.reshape(1, h).astype(jnp.float32), hp, value=1.0)
    beta2 = _pad_last(beta.reshape(1, h).astype(jnp.float32), hp)
    rm2 = _pad_last(running_mean.reshape(1, h).astype(jnp.float32), hp)
    rv2 = _pad_last(running_var.reshape(1, h).astype(jnp.float32), hp, value=1.0)

    limit = _vmem_limit_bytes()
    sx, sw, sy = x.dtype.itemsize, wp.dtype.itemsize, jnp.dtype(out_dtype).itemsize
    tn, tk = _choose_tiles(n, kdim, hp, sx, sw, sy, int(limit * 0.8))
    nj = hp // tn

    out_shape = (jax.ShapeDtypeStruct((n, hp), out_dtype),
                 jax.ShapeDtypeStruct((1, hp), jnp.float32),
                 jax.ShapeDtypeStruct((1, hp), jnp.float32))
    feat_spec = lambda *idx: pl.BlockSpec((1, tn), idx[0])

    if tk == kdim:
        # Single-K pass: no accumulator scratch, x DMA'd once (grid-invariant block).
        grid_spec = pltpu.PrefetchScalarGridSpec(
            num_scalar_prefetch=0,
            grid=(nj,),
            in_specs=[
                pl.BlockSpec((n, kdim), lambda j: (0, 0)),     # x (fetched once)
                pl.BlockSpec((kdim, tn), lambda j: (0, j)),    # w
                pl.BlockSpec((1, tn), lambda j: (0, j)),       # bias
                pl.BlockSpec((1, tn), lambda j: (0, j)),       # gamma
                pl.BlockSpec((1, tn), lambda j: (0, j)),       # beta
                pl.BlockSpec((1, tn), lambda j: (0, j)),       # running_mean
                pl.BlockSpec((1, tn), lambda j: (0, j)),       # running_var
            ],
            out_specs=(
                pl.BlockSpec((n, tn), lambda j: (0, j)),
                pl.BlockSpec((1, tn), lambda j: (0, j)),
                pl.BlockSpec((1, tn), lambda j: (0, j)),
            ),
        )
        kernel = _make_fused_kernel_single_k(n, float(eps), float(momentum))
        dim_sem = ("parallel",)
    else:
        nk = kdim // tk
        grid_spec = pltpu.PrefetchScalarGridSpec(
            num_scalar_prefetch=0,
            grid=(nj, nk),
            in_specs=[
                pl.BlockSpec((n, tk), lambda j, k: (0, k)),
                pl.BlockSpec((tk, tn), lambda j, k: (k, j)),
                pl.BlockSpec((1, tn), lambda j, k: (0, j)),
                pl.BlockSpec((1, tn), lambda j, k: (0, j)),
                pl.BlockSpec((1, tn), lambda j, k: (0, j)),
                pl.BlockSpec((1, tn), lambda j, k: (0, j)),
                pl.BlockSpec((1, tn), lambda j, k: (0, j)),
            ],
            out_specs=(
                pl.BlockSpec((n, tn), lambda j, k: (0, j)),    # resident across k
                pl.BlockSpec((1, tn), lambda j, k: (0, j)),
                pl.BlockSpec((1, tn), lambda j, k: (0, j)),
            ),
            scratch_shapes=[pltpu.VMEM((n, tn), jnp.float32)],
        )
        kernel = _make_fused_kernel_tiled_k(n, float(eps), float(momentum))
        dim_sem = ("parallel", "arbitrary")

    y, nrm, nrv = pl.pallas_call(
        kernel,
        out_shape=out_shape,
        grid_spec=grid_spec,
        compiler_params=pltpu.CompilerParams(
            dimension_semantics=dim_sem,
            vmem_limit_bytes=int(limit),
        ),
    )(x, wp, b2, g2, beta2, rm2, rv2)

    if hp != h:
        y, nrm, nrv = y[:, :h], nrm[:, :h], nrv[:, :h]
    return y, nrm.reshape(h), nrv.reshape(h)


def linear_pallas(x, w, b, *, matmul_dtype=None):
    """Tiled Linear: y = x @ w + b, with the output feature dim padded lane-dense."""
    n, kdim = x.shape
    kdim_w, h = w.shape
    assert kdim == kdim_w
    out_dtype = x.dtype
    if matmul_dtype is not None:
        x = x.astype(matmul_dtype)
        w = w.astype(matmul_dtype)

    hp = _round_up(h, _LANE)
    wp = _pad_last(w, hp)
    b2 = _pad_last(b.reshape(1, h).astype(jnp.float32), hp)

    limit = _vmem_limit_bytes()
    sx, sw, sy = x.dtype.itemsize, wp.dtype.itemsize, jnp.dtype(out_dtype).itemsize
    tn, tk = _choose_tiles(n, kdim, hp, sx, sw, sy, int(limit * 0.8))
    nj = hp // tn

    if tk == kdim:
        grid_spec = pltpu.PrefetchScalarGridSpec(
            num_scalar_prefetch=0,
            grid=(nj,),
            in_specs=[
                pl.BlockSpec((n, kdim), lambda j: (0, 0)),
                pl.BlockSpec((kdim, tn), lambda j: (0, j)),
                pl.BlockSpec((1, tn), lambda j: (0, j)),
            ],
            out_specs=pl.BlockSpec((n, tn), lambda j: (0, j)),
        )
        kernel = _linear_kernel_single_k
        dim_sem = ("parallel",)
    else:
        nk = kdim // tk
        grid_spec = pltpu.PrefetchScalarGridSpec(
            num_scalar_prefetch=0,
            grid=(nj, nk),
            in_specs=[
                pl.BlockSpec((n, tk), lambda j, k: (0, k)),
                pl.BlockSpec((tk, tn), lambda j, k: (k, j)),
                pl.BlockSpec((1, tn), lambda j, k: (0, j)),
            ],
            out_specs=pl.BlockSpec((n, tn), lambda j, k: (0, j)),
            scratch_shapes=[pltpu.VMEM((n, tn), jnp.float32)],
        )
        kernel = _linear_kernel_tiled_k
        dim_sem = ("parallel", "arbitrary")

    y = pl.pallas_call(
        kernel,
        out_shape=jax.ShapeDtypeStruct((n, hp), out_dtype),
        grid_spec=grid_spec,
        compiler_params=pltpu.CompilerParams(
            dimension_semantics=dim_sem,
            vmem_limit_bytes=int(limit),
        ),
    )(x, wp, b2)
    return y[:, :h] if hp != h else y


def mlp_with_batchnorm_forward(x, hidden_params, out_params,
                               *, eps=1e-5, momentum=0.1, matmul_dtype=None):
    """Training-mode forward of MLPWithBatchNorm.

    hidden_params: list of dicts with keys w, b, gamma, beta, running_mean, running_var.
    out_params: (w, b) of the final Linear.
    Returns (logits, [(new_running_mean, new_running_var) per hidden layer]).
    """
    # TODO(synk): eval-mode BN (normalize with running stats) not implemented; this
    # covers the module's default training-mode forward.  At toy shapes a single
    # whole-network resident-weight kernel would beat per-layer pallas_calls.
    h = x
    new_stats = []
    for layer in hidden_params:
        h, nrm, nrv = fused_linear_bn_relu(
            h, layer["w"], layer["b"], layer["gamma"], layer["beta"],
            layer["running_mean"], layer["running_var"],
            eps=eps, momentum=momentum, matmul_dtype=matmul_dtype)
        new_stats.append((nrm, nrv))
    w_out, b_out = out_params
    y = linear_pallas(h, w_out, b_out, matmul_dtype=matmul_dtype)
    return y, new_stats


# ----------------------------------------------------------------------------
# Demo / correctness check
# ----------------------------------------------------------------------------
if __name__ == "__main__":
    EPS = 1e-5
    MOMENTUM = 0.1
    batch = 8
    input_size = 16
    hidden_sizes = (32, 32)
    output_size = 8

    key = jax.random.PRNGKey(0)
    keys = jax.random.split(key, 2 * len(hidden_sizes) + 3)

    hidden_params = []
    prev = input_size
    ki = 0
    for hdim in hidden_sizes:
        w = 0.1 * jax.random.normal(keys[ki], (prev, hdim), dtype=jnp.float32)
        b = 0.05 * jax.random.normal(keys[ki + 1], (hdim,), dtype=jnp.float32)
        hidden_params.append(dict(
            w=w, b=b,
            gamma=jnp.ones((hdim,), jnp.float32),
            beta=jnp.zeros((hdim,), jnp.float32),
            running_mean=jnp.zeros((hdim,), jnp.float32),
            running_var=jnp.ones((hdim,), jnp.float32),
        ))
        prev = hdim
        ki += 2
    w_out = 0.1 * jax.random.normal(keys[ki], (prev, output_size), dtype=jnp.float32)
    b_out = 0.05 * jax.random.normal(keys[ki + 1], (output_size,), dtype=jnp.float32)

    x = jax.random.normal(keys[ki + 2], (batch, input_size), dtype=jnp.float32)

    # Native-f32 operand run (strict check against the pure-JAX reference).
    y, new_stats = mlp_with_batchnorm_forward(
        x, hidden_params, (w_out, b_out), eps=EPS, momentum=MOMENTUM)
    jax.block_until_ready((y, new_stats))

    # Pure-JAX reference of the same training-mode forward.
    h_ref = x
    ref_stats = []
    for layer in hidden_params:
        z = h_ref @ layer["w"] + layer["b"]
        mean = jnp.mean(z, axis=0, keepdims=True)
        var = jnp.mean((z - mean) ** 2, axis=0, keepdims=True)   # biased
        h_ref = jnp.maximum(
            (z - mean) / jnp.sqrt(var + EPS) * layer["gamma"] + layer["beta"], 0.0)
        unbiased = var * batch / (batch - 1)
        ref_stats.append((
            (1.0 - MOMENTUM) * layer["running_mean"] + MOMENTUM * mean.reshape(-1),
            (1.0 - MOMENTUM) * layer["running_var"] + MOMENTUM * unbiased.reshape(-1),
        ))
    y_ref = h_ref @ w_out + b_out

    assert jnp.allclose(y, y_ref, atol=1e-4, rtol=1e-4), "forward mismatch"
    for (nrm, nrv), (rrm, rrv) in zip(new_stats, ref_stats):
        assert jnp.allclose(nrm, rrm, atol=1e-5, rtol=1e-5), "running_mean mismatch"
        assert jnp.allclose(nrv, rrv, atol=1e-5, rtol=1e-5), "running_var mismatch"

    # bf16 matmul-operand path (bf16-native MXU on v5e/v6e/v7x); loose tolerance.
    y_bf16, _ = mlp_with_batchnorm_forward(
        x, hidden_params, (w_out, b_out), eps=EPS, momentum=MOMENTUM,
        matmul_dtype=jnp.bfloat16)
    jax.block_until_ready(y_bf16)
    assert jnp.all(jnp.isfinite(y_bf16)), "bf16 forward not finite"
    assert jnp.allclose(y_bf16, y_ref, atol=1e-1, rtol=1e-1), "bf16 forward mismatch"

    print("KERNEL_OK")
</pallas_src>

<mosaic_0001>
module attributes {stable_mosaic.version = 11 : i64} {
  func.func @kernel(%arg0: i32, %arg1: memref<8x16xf32, #tpu.memory_space<vmem>>, %arg2: memref<16x128xf32, #tpu.memory_space<vmem>>, %arg3: memref<1x128xf32, #tpu.memory_space<vmem>>, %arg4: memref<1x128xf32, #tpu.memory_space<vmem>>, %arg5: memref<1x128xf32, #tpu.memory_space<vmem>>, %arg6: memref<1x128xf32, #tpu.memory_space<vmem>>, %arg7: memref<1x128xf32, #tpu.memory_space<vmem>>, %arg8: memref<8x128xf32, #tpu.memory_space<vmem>>, %arg9: memref<1x128xf32, #tpu.memory_space<vmem>>, %arg10: memref<1x128xf32, #tpu.memory_space<vmem>>) attributes {dimension_semantics = [#tpu.dimension_semantics<parallel>], iteration_bounds = array<i64: 1>, scalar_prefetch = 0 : i64, scratch_operands = 0 : i64, tpu.core_type = #tpu.core_type<tc>, window_params = [{pipeline_mode = #tpu.pipeline_mode<synchronous>, transform_indices = @transform_0, window_bounds = array<i64: 8, 16>}, {transform_indices = @transform_1, window_bounds = array<i64: 16, 128>}, {transform_indices = @transform_2, window_bounds = array<i64: 1, 128>}, {transform_indices = @transform_3, window_bounds = array<i64: 1, 128>}, {transform_indices = @transform_4, window_bounds = array<i64: 1, 128>}, {transform_indices = @transform_5, window_bounds = array<i64: 1, 128>}, {transform_indices = @transform_6, window_bounds = array<i64: 1, 128>}, {transform_indices = @transform_7, window_bounds = array<i64: 8, 128>}, {transform_indices = @transform_8, window_bounds = array<i64: 1, 128>}, {transform_indices = @transform_9, window_bounds = array<i64: 1, 128>}]} {
    %c0 = arith.constant 0 : index
    %c0_0 = arith.constant 0 : index
    %0 = vector.load %arg1[%c0, %c0_0] : memref<8x16xf32, #tpu.memory_space<vmem>>, vector<8x16xf32>
    %c0_1 = arith.constant 0 : index
    %c0_2 = arith.constant 0 : index
    %1 = vector.load %arg2[%c0_1, %c0_2] : memref<16x128xf32, #tpu.memory_space<vmem>>, vector<16x128xf32>
    %cst = arith.constant dense<0.000000e+00> : vector<8x128xf32>
    %2 = tpu.matmul %0, %1, %cst {dimension_numbers = #tpu.dot_dimension_numbers<[1], [0], [0], [1], [0, 0, 1, 1], [], []>} : vector<8x16xf32>, vector<16x128xf32>, vector<8x128xf32> -> vector<8x128xf32>
    %c0_3 = arith.constant 0 : index
    %c0_4 = arith.constant 0 : index
    %3 = vector.load %arg3[%c0_3, %c0_4] : memref<1x128xf32, #tpu.memory_space<vmem>>, vector<1x128xf32>
    %c0_5 = arith.constant 0 : index
    %c0_6 = arith.constant 0 : index
    %4 = vector.load %arg4[%c0_5, %c0_6] : memref<1x128xf32, #tpu.memory_space<vmem>>, vector<1x128xf32>
    %c0_7 = arith.constant 0 : index
    %c0_8 = arith.constant 0 : index
    %5 = vector.load %arg5[%c0_7, %c0_8] : memref<1x128xf32, #tpu.memory_space<vmem>>, vector<1x128xf32>
    %c0_9 = arith.constant 0 : index
    %c0_10 = arith.constant 0 : index
    %6 = vector.load %arg6[%c0_9, %c0_10] : memref<1x128xf32, #tpu.memory_space<vmem>>, vector<1x128xf32>
    %c0_11 = arith.constant 0 : index
    %c0_12 = arith.constant 0 : index
    %7 = vector.load %arg7[%c0_11, %c0_12] : memref<1x128xf32, #tpu.memory_space<vmem>>, vector<1x128xf32>
    %cst_13 = arith.constant dense<0.000000e+00> : vector<128xf32>
    %8 = vector.multi_reduction <add>, %2, %cst_13 [0] : vector<8x128xf32> to vector<128xf32>
    %9 = vector.shape_cast %8 : vector<128xf32> to vector<1x128xf32>
    %10 = arith.mulf %2, %2 : vector<8x128xf32>
    %cst_14 = arith.constant dense<0.000000e+00> : vector<128xf32>
    %11 = vector.multi_reduction <add>, %10, %cst_14 [0] : vector<8x128xf32> to vector<128xf32>
    %12 = vector.shape_cast %11 : vector<128xf32> to vector<1x128xf32>
    %cst_15 = arith.constant 1.250000e-01 : f32
    %13 = vector.broadcast %cst_15 : f32 to vector<1x128xf32>
    %14 = arith.mulf %9, %13 : vector<1x128xf32>
    %cst_16 = arith.constant 1.250000e-01 : f32
    %15 = vector.broadcast %cst_16 : f32 to vector<1x128xf32>
    %16 = arith.mulf %12, %15 : vector<1x128xf32>
    %17 = arith.mulf %14, %14 : vector<1x128xf32>
    %18 = arith.subf %16, %17 : vector<1x128xf32>
    %cst_17 = arith.constant 0.000000e+00 : f32
    %19 = vector.broadcast %cst_17 : f32 to vector<1x128xf32>
    %20 = arith.maximumf %18, %19 : vector<1x128xf32>
    %cst_18 = arith.constant 9.99999974E-6 : f32
    %21 = vector.broadcast %cst_18 : f32 to vector<1x128xf32>
    %22 = arith.addf %20, %21 : vector<1x128xf32>
    %23 = math.rsqrt %22 : vector<1x128xf32>
    %24 = arith.mulf %4, %23 : vector<1x128xf32>
    %25 = vector.broadcast %14 : vector<1x128xf32> to vector<8x128xf32>
    %26 = arith.subf %2, %25 : vector<8x128xf32>
    %27 = vector.broadcast %24 : vector<1x128xf32> to vector<8x128xf32>
    %28 = arith.mulf %26, %27 : vector<8x128xf32>
    %29 = vector.broadcast %5 : vector<1x128xf32> to vector<8x128xf32>
    %30 = arith.addf %28, %29 : vector<8x128xf32>
    %cst_19 = arith.constant 0.000000e+00 : f32
    %31 = vector.broadcast %cst_19 : f32 to vector<8x128xf32>
    %32 = arith.maximumf %30, %31 : vector<8x128xf32>
    %c0_20 = arith.constant 0 : index
    %c0_21 = arith.constant 0 : index
    %33 = vector.load %arg8[%c0_20, %c0_21] : memref<8x128xf32, #tpu.memory_space<vmem>>, vector<8x128xf32>
    tpu.vector_store %arg8[%c0_20, %c0_21], %32 {strides = array<i32>} : memref<8x128xf32, #tpu.memory_space<vmem>>, vector<8x128xf32>,
    %cst_22 = arith.constant 0.899999976 : f32
    %34 = vector.broadcast %cst_22 : f32 to vector<1x128xf32>
    %35 = arith.mulf %34, %6 : vector<1x128xf32>
    %36 = arith.addf %14, %3 : vector<1x128xf32>
    %cst_23 = arith.constant 1.000000e-01 : f32
    %37 = vector.broadcast %cst_23 : f32 to vector<1x128xf32>
    %38 = arith.mulf %37, %36 : vector<1x128xf32>
    %39 = arith.addf %35, %38 : vector<1x128xf32>
    %c0_24 = arith.constant 0 : index
    %c0_25 = arith.constant 0 : index
    %40 = vector.load %arg9[%c0_24, %c0_25] : memref<1x128xf32, #tpu.memory_space<vmem>>, vector<1x128xf32>
    tpu.vector_store %arg9[%c0_24, %c0_25], %39 {strides = array<i32>} : memref<1x128xf32, #tpu.memory_space<vmem>>, vector<1x128xf32>,
    %cst_26 = arith.constant 0.899999976 : f32
    %41 = vector.broadcast %cst_26 : f32 to vector<1x128xf32>
    %42 = arith.mulf %41, %7 : vector<1x128xf32>
    %cst_27 = arith.constant 1.14285719 : f32
    %43 = vector.broadcast %cst_27 : f32 to vector<1x128xf32>
    %44 = arith.mulf %20, %43 : vector<1x128xf32>
    %cst_28 = arith.constant 1.000000e-01 : f32
    %45 = vector.broadcast %cst_28 : f32 to vector<1x128xf32>
    %46 = arith.mulf %45, %44 : vector<1x128xf32>
    %47 = arith.addf %42, %46 : vector<1x128xf32>
    %c0_29 = arith.constant 0 : index
    %c0_30 = arith.constant 0 : index
    %48 = vector.load %arg10[%c0_29, %c0_30] : memref<1x128xf32, #tpu.memory_space<vmem>>, vector<1x128xf32>
    tpu.vector_store %arg10[%c0_29, %c0_30], %47 {strides = array<i32>} : memref<1x128xf32, #tpu.memory_space<vmem>>, vector<1x128xf32>,
    return
  }
  func.func @transform_0(%arg0: i32) -> (i32, i32) {
    %c0_i32 = arith.constant 0 : i32
    %c0_i32_0 = arith.constant 0 : i32
    %c0_i32_1 = arith.constant 0 : i32
    return %c0_i32, %c0_i32_0 : i32, i32
  }
  func.func @transform_1(%arg0: i32) -> (i32, i32) {
    %c0_i32 = arith.constant 0 : i32
    %c0_i32_0 = arith.constant 0 : i32
    return %c0_i32, %arg0 : i32, i32
  }
  func.func @transform_2(%arg0: i32) -> (i32, i32) {
    %c0_i32 = arith.constant 0 : i32
    %c0_i32_0 = arith.constant 0 : i32
    return %c0_i32, %arg0 : i32, i32
  }
  func.func @transform_3(%arg0: i32) -> (i32, i32) {
    %c0_i32 = arith.constant 0 : i32
    %c0_i32_0 = arith.constant 0 : i32
    return %c0_i32, %arg0 : i32, i32
  }
  func.func @transform_4(%arg0: i32) -> (i32, i32) {
    %c0_i32 = arith.constant 0 : i32
    %c0_i32_0 = arith.constant 0 : i32
    return %c0_i32, %arg0 : i32, i32
  }
  func.func @transform_5(%arg0: i32) -> (i32, i32) {
    %c0_i32 = arith.constant 0 : i32
    %c0_i32_0 = arith.constant 0 : i32
    return %c0_i32, %arg0 : i32, i32
  }
  func.func @transform_6(%arg0: i32) -> (i32, i32) {
    %c0_i32 = arith.constant 0 : i32
    %c0_i32_0 = arith.constant 0 : i32
    return %c0_i32, %arg0 : i32, i32
  }
  func.func @transform_7(%arg0: i32) -> (i32, i32) {
    %c0_i32 = arith.constant 0 : i32
    %c0_i32_0 = arith.constant 0 : i32
    return %c0_i32, %arg0 : i32, i32
  }
  func.func @transform_8(%arg0: i32) -> (i32, i32) {
    %c0_i32 = arith.constant 0 : i32
    %c0_i32_0 = arith.constant 0 : i32
    return %c0_i32, %arg0 : i32, i32
  }
  func.func @transform_9(%arg0: i32) -> (i32, i32) {
    %c0_i32 = arith.constant 0 : i32
    %c0_i32_0 = arith.constant 0 : i32
    return %c0_i32, %arg0 : i32, i32
  }
}

</mosaic_0001>

<bundles_post_ra>
// kernel: tpu_custom_call.1
= control target key start
LH: loop header
LB: loop body
LE: loop exit
PB: predicated region body
PF: predicated region fallthrough
CT: control target
= control target key end

     0   :  { %15 = vsyncpa [#allocation3], 0  ;;  %s419_s0 = inlined_call_operand.hbm [shape: f32[8,16], index: 0, kind: input, shape index: {}]   ;;  %s420_s1 = inlined_call_operand.hbm [shape: f32[16,128], index: 1, kind: input, shape index: {}]   ;;  %s421_s2 = inlined_call_operand.vmem [shape: f32[1,128], index: 2, kind: input, shape index: {}]   ;;  %s422_s3 = inlined_call_operand.vmem [shape: f32[1,128], index: 3, kind: input, shape index: {}]   ;;  %s423_s4 = inlined_call_operand.vmem [shape: f32[1,128], index: 4, kind: input, shape index: {}]   ;;  %s424_s5 = inlined_call_operand.vmem [shape: f32[1,128], index: 5, kind: input, shape index: {}]   ;;  %s425_s6 = inlined_call_operand.vmem [shape: f32[1,128], index: 6, kind: input, shape index: {}]   ;;  %s426_s7 = inlined_call_operand.hbm [shape: f32[8,128], index: 7, kind: output, shape index: {0}]   ;;  %s427_s8 = inlined_call_operand.hbm [shape: f32[1,128], index: 8, kind: output, shape index: {1}]   ;;  %s428_s9 = inlined_call_operand.hbm [shape: f32[1,128], index: 9, kind: output, shape index: {2}]  }
   0x1   :  { %16 = vsyncpa [#allocation6], 0 }
   0x2   :  { %17 = vsyncpa [#allocation4], 0 }
   0x3   :  { %18 = vsyncpa [#allocation9], 0  ;;  %s24_s11 = sshll.u32 %s419_s0, 4  ;;  %s332_s12 = smov [#allocation2]   ;;  %s25_s11 = int_to_ptr.hbm [resolvable:$true] %s24_s11 }
   0x4   :  { %s26_s13 = sshll.u32 %s332_s12, 4  ;;  %s34_s16 = sshll.u32 %s420_s1, 4  ;;  %s27_s13 = int_to_ptr.vmem [resolvable:$true] %s26_s13  ;;  %s35_s16 = int_to_ptr.hbm [resolvable:$true] %s34_s16 }
   0x5   :  { %29 = dma.hbm_to_vmem [thread:$0]  %s25_s11, 128, %s27_s13, [#allocation3]  }
   0x6   :  { %s333_s17 = smov [#allocation5]   ;;  %s334_s19 = smov 128  }
   0x7   :  { %s36_s18 = sshll.u32 %s333_s17, 4  ;;  %s335_s20 = smov 8   ;;  %s37_s18 = int_to_ptr.vmem [resolvable:$true] %s36_s18 }
   0x8   :  { %42 = dma.hbm_to_vmem [thread:$0]  %s35_s16, 256, %s37_s18, [#allocation6], %s334_s19, %s334_s19, %s335_s20  }
   0x9   :  { %324 = dma.done.wait [#allocation3], 128  }
   0xa   :  { %325 = vsyncadd [#allocation3], 4294967168 }
   0xb   :  { %326 = dma.done.wait [#allocation6], 256  }
   0xc   :  { %327 = vsyncadd [#allocation6], 4294967040  ;;  %v63_v0 = vld [vmem:[#allocation5 + $0x8] sm:$0xff]  ;;  %v62_v1 = vld [vmem:[#allocation5] sm:$0xff]  ;;  %vm64_vm0 = vcmask 130048   ;;  %s336_s23 = smov [#allocation8]  }
   0xd   :  { %82 = vmatpush.msra.mxu0 %v63_v0  ;;  %v61_v2 = vld [vmem:[#allocation2] sm:$0xff]  ;;  %s160_s24 = sshll.u32 %s336_s23, 4  ;;  %s162_s27 = sshll.u32 %s427_s8, 4  ;;  %s161_s24 = int_to_ptr.vmem [resolvable:$true] %s160_s24  ;;  %s163_s27 = int_to_ptr.hbm [resolvable:$true] %s162_s27 }
   0xe   :  { %v88_v16 = vld [vmem:[%s421_s2] sm:$0x1]  ;;  %s173_s11 = sshll.u32 %s428_s9, 4  ;;  %s338_s13 = smov [#allocation7]   ;;  %s174_s11 = int_to_ptr.hbm [resolvable:$true] %s173_s11 }
   0xf   :  { %83 = vmatpush.msra.mxu0 %v62_v1  ;;  %v91_v17 = vld [vmem:[%s424_s5] sm:$0x1]  ;;  %s337_s5 = smov [#allocation10]   ;;  %s149_s14 = sshll.u32 %s338_s13, 4  ;;  %s150_s14 = int_to_ptr.vmem [resolvable:$true] %s149_s14 }
  0x10   :  { %193 = vmatmul.msk.f32.vlgmr.msra.gmra.mxu0 %vm64_vm0, %v61_v2  ;;  %v134_v22 = vmul.f32 0.9, %v91_v17  ;;  %v92_v26 = vld [vmem:[%s425_s6] sm:$0x1]  ;;  %s171_s29 = sshll.u32 %s337_s5, 4  ;;  %s151_s17 = sshll.u32 %s426_s7, 4  ;;  %s172_s29 = int_to_ptr.vmem [resolvable:$true] %s171_s29  ;;  %s152_s17 = int_to_ptr.hbm [resolvable:$true] %s151_s17 }
  0x11   :  { %v139_v29 = vmul.f32 0.9, %v92_v26  ;;  %v89_v39 = vld [vmem:[%s422_s3] sm:$0x1] }
  0x12   :  { %v201_v45 = vld [vmem:[%s423_s4] ss:$0 sm:$0xff] }
  0x8d   :  { %v85_v3 = vpop.f32.mrf.mxu0 }
  0x8e   :  { %v93_v4 = vrot.slane %v85_v3, 4  ;;  %v99_v5 = vmul.f32 %v85_v3, %v85_v3 }
  0x90   :  { %v94_v6 = vadd.f32 %v93_v4, %v85_v3  ;;  %v100_v7 = vrot.slane %v99_v5, 4 }
  0x92   :  { %v95_v8 = vrot.slane %v94_v6, 2  ;;  %v101_v9 = vadd.f32 %v100_v7, %v99_v5 }
  0x94   :  { %v96_v10 = vadd.f32 %v95_v8, %v94_v6  ;;  %v102_v11 = vrot.slane %v101_v9, 2 }
  0x96   :  { %v97_v12 = vrot.slane %v96_v10, 1  ;;  %v103_v13 = vadd.f32 %v102_v11, %v101_v9 }
  0x98   :  { %v98_v14 = vadd.f32 %v97_v12, %v96_v10  ;;  %v104_v15 = vrot.slane %v103_v13, 1 }
  0x9a   :  { %v105_v18 = vadd.f32 %v104_v15, %v103_v13  ;;  %v106_v19 = vmul.f32 0.125, %v98_v14 }
  0x9c   :  { %v107_v20 = vmul.f32 0.125, %v105_v18  ;;  %v108_v21 = vmul.f32 %v106_v19, %v106_v19  ;;  %v135_v23 = vadd.f32 %v106_v19, %v88_v16  ;;  %v123_v43 = vsub.f32 %v85_v3, %v106_v19 }
  0x9e   :  { %v109_v24 = vsub.f32 %v107_v20, %v108_v21  ;;  %v136_v25 = vmul.f32 0.1, %v135_v23 }
  0xa0   :  { %v110_v27 = vmax.f32 %v109_v24, 0.0  ;;  %v137_v28 = vadd.f32 %v136_v25, %v134_v22 }
  0xa2   :  { %v111_v30 = vadd.f32 1e-05, %v110_v27  ;;  %138 = vst [vmem:[#allocation8] sm:$0x1] %v137_v28  ;;  %v140_v31 = vmul.f32 1.1428572, %v110_v27 }
  0xa3   :  { %165 = dma.vmem_to_hbm [thread:$0]  %s161_s24, 16, %s163_s27, [#allocation9]  }
  0xa4   :  { %202 = vrsqrt.f32 %v111_v30  ;;  %v141_v32 = vmul.f32 0.1, %v140_v31  ;;  %vm118_vm2 = vweird.f32 %v111_v30 }
  0xa6   :  { %v142_v33 = vadd.f32 %v141_v32, %v139_v29 }
  0xa8   :  { %143 = vst [vmem:[#allocation10] sm:$0x1] %v142_v33 }
  0xa9   :  { %176 = dma.vmem_to_hbm [thread:$0]  %s172_s29, 16, %s174_s11, [#allocation9]  }
  0xaa   :  { %v203_v34 = vpop.eup %202 }
  0xab   :  { %v113_v35 = vmul.f32 %v203_v34, %v111_v30  ;;  %vm119_vm1 = vweird.f32 %v203_v34 }
  0xac   :  { %vm120_vm3 = vmor %vm118_vm2, %vm119_vm1 }
  0xad   :  { %v114_v36 = vmul.f32 %v203_v34, %v113_v35 }
  0xaf   :  { %v115_v37 = vmul.f32 0.5, %v114_v36 }
  0xb1   :  { %v116_v38 = vsub.f32 1.5, %v115_v37 }
  0xb3   :  { %v117_v40 = vmul.f32 %v203_v34, %v116_v38 }
  0xb5   :  { %v121_v41 = vsel %vm120_vm3, %v203_v34, %v117_v40 }
  0xb6   :  { %v122_v42 = vmul.f32 %v121_v41, %v89_v39 }
  0xb8   :  { %v125_v44 = vperm.slane %v122_v42, 0 }
  0xba   :  { %v127_v46 = vmul.f32 %v125_v44, %v123_v43 }
  0xbc   :  { %v131_v47 = vadd.f32 %v201_v45, %v127_v46 }
  0xbe   :  { %v132_v48 = vmax.f32 %v131_v47, 0.0 }
  0xc0   :  { %133 = vst [vmem:[#allocation7] sm:$0xff] %v132_v48 }
  0xc1   :  { %154 = dma.vmem_to_hbm [thread:$0]  %s150_s14, 128, %s152_s17, [#allocation4]  }
  0xc2   :  { %328 = dma.done.wait [#allocation4], 128  }
  0xc3   :  { %329 = vsyncadd [#allocation4], 4294967168 }
  0xc4   :  { %330 = dma.done.wait [#allocation9], 32  }
  0xc5   :  { %331 = vsyncadd [#allocation9], 4294967264 }
  0xc6   :  { %189 = vsyncpa [#allocation3], 1 }
  0xc7   :  { %190 = vsyncpa [#allocation6], 1 }
  0xc8   :  { %191 = vsyncpa [#allocation4], 1 }
  0xc9   :  { %192 = vsyncpa [#allocation9], 1 }

</bundles_post_ra>
